<compile_context>
chip_gen: v7x
topology: tpu7x:2x2x1
jax: 0.10.0
libtpu: 0.0.40
codegen_flags: <defaults>
</compile_context>

<pallas_src>
import functools

import jax
import jax.numpy as jnp
from jax import lax
from jax.experimental import pallas as pl
from jax.experimental.pallas import tpu as pltpu

_MiB = 1024 * 1024


def _detect_tpu():
    """Returns (vmem_capacity_bytes, has_bf16_eup) with defensive fallbacks."""
    kind = ""
    try:
        kind = jax.devices()[0].device_kind.lower()
    except Exception:
        pass
    vmem = None
    try:
        info = pltpu.get_tpu_info()
        v = getattr(info, "vmem_capacity_bytes", None)
        vmem = int(v) if v else None
    except Exception:
        vmem = None
    if not vmem:
        if ("v2" in kind) or ("v3" in kind):
            vmem = 16 * _MiB
        elif any(v in kind for v in ("v4", "v5", "v6")):
            vmem = 128 * _MiB
        else:                          # v7x (64 MiB) or unknown: be conservative
            vmem = 64 * _MiB
    # bf16 EUP exists on v6e and later; keep f32 exp on v5 and older.
    has_bf16_eup = not any(v in kind for v in ("v2", "v3", "v4", "v5"))
    return int(vmem), has_bf16_eup


def _pick_vmem_limit(vmem_capacity):
    if vmem_capacity >= 96 * _MiB:                     # v5e / v6e: 128 MiB physical
        return 96 * _MiB
    return min(56 * _MiB, (vmem_capacity * 7) // 8)    # v7x: 64 MiB physical (and smaller)


def _choose_tile_rows(n_rows, n_classes, x_dtype, t_dtype, vmem_limit_bytes):
    """Largest sublane-aligned row tile whose per-step VMEM footprint fits the budget."""
    x_sz = jnp.dtype(x_dtype).itemsize
    t_sz = jnp.dtype(t_dtype).itemsize
    # Per-row VMEM footprint per grid step:
    #   2 pipeline buffers x (logits + targets) in their native dtypes (streamed DMAs)
    # + ~4 full-tile f32 intermediates (upcasts / exp / products) that Mosaic
    #   materializes for block-wide jnp ops.
    per_row = n_classes * (2 * (x_sz + t_sz) + 4 * 4)
    budget = int(vmem_limit_bytes * 0.6)               # headroom for everything else
    cap = max(1, budget // per_row)
    if n_rows <= cap:
        return n_rows                                  # single tile (full-dim block is legal)
    pack = max(8, 32 // min(x_sz, t_sz))               # f32 -> 8, bf16 -> 16, int8 -> 32
    cap = min(cap, 4096)                               # keep vreg / live-range pressure sane
    return max(pack, (cap // pack) * pack)


def _soft_ce_kernel(x_ref, t_ref, out_ref, *, tile_rows, tiles_per_core, n_rows,
                    targets_normalized, exp_dtype):
    c = pl.program_id(0)          # core group (megacore "parallel" axis)
    i = pl.program_id(1)          # row-tile sweep ("arbitrary" reduction axis)

    @pl.when(i == 0)
    def _init():
        out_ref[...] = jnp.zeros_like(out_ref)

    # Stream in native dtype (bf16 welcome); upcast in-kernel.
    x = x_ref[...].astype(jnp.float32)                 # (TM, C)
    t = t_ref[...].astype(jnp.float32)                 # (TM, C)

    # Ragged-row mask. Uses the *unclamped* global tile id, so rows of a ragged
    # tail tile or a clamped (duplicate) trailing tile are zeroed before any
    # compute — jnp.where is a select, so garbage/NaN tails never propagate.
    g = c * tiles_per_core + i
    row_ids = g * tile_rows + lax.broadcasted_iota(jnp.int32, (tile_rows, 1), 0)
    valid = row_ids < n_rows                           # (TM, 1)
    x = jnp.where(valid, x, 0.0)

    # Soft cross entropy without materializing log_softmax:
    #   -sum(t * (z - lse)) = lse * sum(t) - sum(t * z),   z = x - max(x)
    m = jnp.max(x, axis=-1, keepdims=True)             # (TM, 1)
    z = x - m
    # exp on the EUP; bf16 exp (v6e/v7x) halves EUP pressure, sum/log stay f32.
    ez = jnp.exp(z.astype(exp_dtype)).astype(jnp.float32)
    lse = jnp.log(jnp.sum(ez, axis=-1, keepdims=True))            # (TM, 1)
    tz = jnp.sum(t * z, axis=-1, keepdims=True)                   # (TM, 1)

    if targets_normalized:
        # sum(t) == 1 per row: one fewer full (TM, C) reduction per step.
        per_row = jnp.where(valid, lse - tz, 0.0)
    else:
        t = jnp.where(valid, t, 0.0)
        t_sum = jnp.sum(t, axis=-1, keepdims=True)
        per_row = lse * t_sum - tz                     # masked rows give exactly 0

    # Vector accumulate into the per-core resident output block: no per-step
    # cross-sublane reduce and no SMEM scalar chained across DMA waits. The tiny
    # final reduce + divide happens in the wrapper.
    out_ref[...] += per_row[None, :, :]


def soft_target_cross_entropy(logits, targets, *, tile_rows=None,
                              targets_normalized=False, exp_dtype=None):
    """Pallas streaming SoftTargetCrossEntropy over 2-D (rows, classes) inputs."""
    assert logits.shape == targets.shape and logits.ndim == 2
    n_rows, n_classes = logits.shape

    vmem_capacity, has_bf16_eup = _detect_tpu()
    vmem_limit = _pick_vmem_limit(vmem_capacity)

    if tile_rows is None:
        tile_rows = _choose_tile_rows(n_rows, n_classes, logits.dtype,
                                      targets.dtype, vmem_limit)
    tile_rows = max(1, min(int(tile_rows), n_rows))
    n_tiles = pl.cdiv(n_rows, tile_rows)
    if n_tiles > 1:
        assert tile_rows % 8 == 0, "tile_rows must be a multiple of 8 when tiling"

    # Two core groups: on v7x (2 TensorCores/chip) the leading "parallel" axis is
    # split across cores with per-core partial accumulators (distinct output
    # blocks, no shared writer); on 1-TC chips it simply iterates sequentially.
    n_cores = 2 if n_tiles >= 2 else 1
    tiles_per_core = pl.cdiv(n_tiles, n_cores)

    if exp_dtype is None:
        exp_dtype = (jnp.bfloat16
                     if has_bf16_eup and jnp.dtype(logits.dtype).itemsize < 4
                     else jnp.float32)

    kernel = functools.partial(
        _soft_ce_kernel,
        tile_rows=tile_rows, tiles_per_core=tiles_per_core, n_rows=n_rows,
        targets_normalized=targets_normalized, exp_dtype=exp_dtype)

    def in_map(c, i):
        # Clamp so a fully out-of-range trailing tile (odd tile count split over
        # two core groups) re-reads the last valid block; its rows are masked.
        return (jnp.minimum(c * tiles_per_core + i, n_tiles - 1), 0)

    partials = pl.pallas_call(
        kernel,
        out_shape=jax.ShapeDtypeStruct((n_cores, tile_rows, 1), jnp.float32),
        grid=(n_cores, tiles_per_core),
        in_specs=[
            pl.BlockSpec((tile_rows, n_classes), in_map),
            pl.BlockSpec((tile_rows, n_classes), in_map),
        ],
        out_specs=pl.BlockSpec((1, tile_rows, 1), lambda c, i: (c, 0, 0)),
        compiler_params=pltpu.CompilerParams(
            dimension_semantics=("parallel", "arbitrary"),
            vmem_limit_bytes=vmem_limit,
        ),
    )(logits, targets)

    return jnp.sum(partials) / jnp.float32(n_rows)


def _soft_ce_ref(logits, targets):
    """Pure-JAX SoftTargetCrossEntropy (also used for the tiny cls-loss path)."""
    logp = jax.nn.log_softmax(logits.astype(jnp.float32), axis=-1)
    return jnp.mean(jnp.sum(-targets.astype(jnp.float32) * logp, axis=-1))


def token_label_loss(output, target, cls_weight=1.0, tok_weight=0.5, *,
                     cls_criterion=None, tok_targets_normalized=True,
                     tok_tile_rows=None):
    """JAX/Pallas equivalent of TokenLabelLoss.forward.

    output = (output_cls, output_aux_dict), target = (target_cls, target_aux_dict)
      output_cls        : (B, C) class logits
      output_aux['tok'] : (B, N, C) token logits
      target_cls        : (B, C) soft targets
      target_aux['tok'] : (B, N, C) soft token targets

    `cls_criterion` mirrors the PyTorch `criterion` ctor arg; defaults to
    SoftTargetCrossEntropy. Token-labeling / mixup soft targets sum to 1 per row,
    so the token branch defaults to the normalized fast path; pass
    tok_targets_normalized=False for fully general targets.
    """
    output_cls, output_aux = output
    target_cls, target_aux = target

    if cls_criterion is None:
        # TODO(synk): arbitrary injected `criterion` modules are not translated;
        # SoftTargetCrossEntropy (the standard token-labeling choice) is used.
        cls_criterion = _soft_ce_ref
    # Tiny (B, C) loss: plain JAX (a dedicated pallas_call for a few KB is pure
    # launch overhead + an extra HBM round trip).
    loss = cls_criterion(output_cls, target_cls) * cls_weight

    if 'tok' in output_aux:
        tok_logits = output_aux['tok']
        tok_targets = target_aux['tok']
        B, N, C = tok_logits.shape
        loss_tok = soft_target_cross_entropy(
            tok_logits.reshape(B * N, C), tok_targets.reshape(B * N, C),
            tile_rows=tok_tile_rows,
            targets_normalized=tok_targets_normalized)
        loss = loss + loss_tok * tok_weight
    return loss


if __name__ == "__main__":
    key = jax.random.PRNGKey(0)
    k1, k2, k3, k4, k5, k6, k7, k8 = jax.random.split(key, 8)

    # --- TokenLabelLoss at module-sized small shapes --------------------------
    B, N, C = 2, 8, 16
    cls_weight, tok_weight = 1.0, 0.5
    output_cls = jax.random.normal(k1, (B, C), dtype=jnp.float32)
    output_tok = jax.random.normal(k2, (B, N, C), dtype=jnp.float32)
    target_cls = jax.nn.softmax(jax.random.normal(k3, (B, C), dtype=jnp.float32), axis=-1)
    target_tok = jax.nn.softmax(jax.random.normal(k4, (B, N, C), dtype=jnp.float32), axis=-1)

    output = (output_cls, {'tok': output_tok})
    target = (target_cls, {'tok': target_tok})

    loss = jax.block_until_ready(
        token_label_loss(output, target, cls_weight, tok_weight))
    ref = (cls_weight * _soft_ce_ref(output_cls, target_cls)
           + tok_weight * _soft_ce_ref(output_tok.reshape(B * N, C),
                                       target_tok.reshape(B * N, C)))
    assert jnp.allclose(loss, ref, rtol=1e-4, atol=1e-4), (loss, ref)

    # --- Multi-tile streaming path: ragged last tile + 2 core-group split -----
    M2, C2 = 26, 16                                # 4 tiles of 8 -> 2 per core group
    x2 = jax.random.normal(k5, (M2, C2), dtype=jnp.float32)
    t2 = jax.nn.softmax(jax.random.normal(k6, (M2, C2), dtype=jnp.float32), axis=-1)
    got2 = jax.block_until_ready(
        soft_target_cross_entropy(x2, t2, tile_rows=8, targets_normalized=True))
    ref2 = _soft_ce_ref(x2, t2)
    assert jnp.allclose(got2, ref2, rtol=1e-4, atol=1e-4), (got2, ref2)

    # --- General (unnormalized targets) path + fully-out-of-range clamped tile
    # (24 rows -> 3 tiles of 8 -> core group 1 gets a clamped 4th tile).
    M3 = 24
    x3 = jax.random.normal(k7, (M3, C2), dtype=jnp.float32)
    t3 = jax.random.uniform(k8, (M3, C2), dtype=jnp.float32)      # rows do NOT sum to 1
    got3 = jax.block_until_ready(
        soft_target_cross_entropy(x3, t3, tile_rows=8, targets_normalized=False))
    ref3 = _soft_ce_ref(x3, t3)
    assert jnp.allclose(got3, ref3, rtol=1e-4, atol=1e-4), (got3, ref3)

    # --- Non-128-multiple class dim (lane-tail masking), f32 -------------------
    M4, C4 = 24, 1000
    kx, kt = jax.random.split(k5)
    x4 = jax.random.normal(kx, (M4, C4), dtype=jnp.float32)
    t4 = jax.nn.softmax(jax.random.normal(kt, (M4, C4), dtype=jnp.float32), axis=-1)
    got4 = jax.block_until_ready(
        soft_target_cross_entropy(x4, t4, tile_rows=8, targets_normalized=True))
    ref4 = _soft_ce_ref(x4, t4)
    assert jnp.allclose(got4, ref4, rtol=1e-4, atol=1e-4), (got4, ref4)

    # --- bf16 streamed as-is (half the HBM bytes), in-kernel upcast; bf16 exp
    # on chips with a bf16 EUP; C=1000 lane tail again.
    x5 = x4.astype(jnp.bfloat16)
    t5 = t4.astype(jnp.bfloat16)
    got5 = jax.block_until_ready(
        soft_target_cross_entropy(x5, t5, tile_rows=16, targets_normalized=True))
    ref5 = _soft_ce_ref(x5, t5)
    assert jnp.allclose(got5, ref5, rtol=2e-2, atol=2e-2), (got5, ref5)

    print("KERNEL_OK")
</pallas_src>

<mosaic_0001>
module attributes {stable_mosaic.version = 11 : i64} {
  func.func @_soft_ce_kernel(%arg0: i32, %arg1: i32, %arg2: memref<16x16xf32, #tpu.memory_space<vmem>>, %arg3: memref<16x16xf32, #tpu.memory_space<vmem>>, %arg4: memref<1x16x1xf32, #tpu.memory_space<vmem>>) attributes {dimension_semantics = [#tpu.dimension_semantics<parallel>, #tpu.dimension_semantics<arbitrary>], iteration_bounds = array<i64: 1, 1>, scalar_prefetch = 0 : i64, scratch_operands = 0 : i64, tpu.core_type = #tpu.core_type<tc>, window_params = [{transform_indices = @transform_0, window_bounds = array<i64: 16, 16>}, {transform_indices = @transform_1, window_bounds = array<i64: 16, 16>}, {transform_indices = @transform_2, window_bounds = array<i64: 1, 16, 1>}]} {
    %c0_i32 = arith.constant 0 : i32
    %0 = arith.cmpi eq, %arg1, %c0_i32 : i32
    %1 = arith.extui %0 : i1 to i32
    %c0_i32_0 = arith.constant 0 : i32
    %2 = arith.cmpi ne, %1, %c0_i32_0 : i32
    scf.if %2 {
      %cst_15 = arith.constant 0.000000e+00 : f32
      %35 = vector.broadcast %cst_15 : f32 to vector<1x16x1xf32>
      %c0_16 = arith.constant 0 : index
      %c0_17 = arith.constant 0 : index
      %c0_18 = arith.constant 0 : index
      %36 = vector.load %arg4[%c0_16, %c0_17, %c0_18] : memref<1x16x1xf32, #tpu.memory_space<vmem>>, vector<1x16x1xf32>
      tpu.vector_store %arg4[%c0_16, %c0_17, %c0_18], %35 {strides = array<i32>} : memref<1x16x1xf32, #tpu.memory_space<vmem>>, vector<1x16x1xf32>,
    } else {
    }
    %c0 = arith.constant 0 : index
    %c0_1 = arith.constant 0 : index
    %3 = vector.load %arg2[%c0, %c0_1] : memref<16x16xf32, #tpu.memory_space<vmem>>, vector<16x16xf32>
    %c0_2 = arith.constant 0 : index
    %c0_3 = arith.constant 0 : index
    %4 = vector.load %arg3[%c0_2, %c0_3] : memref<16x16xf32, #tpu.memory_space<vmem>>, vector<16x16xf32>
    %c1_i32 = arith.constant 1 : i32
    %5 = arith.muli %arg0, %c1_i32 : i32
    %6 = arith.addi %5, %arg1 : i32
    %c16_i32 = arith.constant 16 : i32
    %7 = arith.muli %6, %c16_i32 : i32
    %8 = tpu.iota {dimensions = array<i32: 0>} : vector<16x1xi32>
    %9 = vector.broadcast %7 : i32 to vector<16x1xi32>
    %10 = arith.addi %9, %8 : vector<16x1xi32>
    %c16_i32_4 = arith.constant 16 : i32
    %11 = vector.broadcast %c16_i32_4 : i32 to vector<16x1xi32>
    %12 = arith.cmpi slt, %10, %11 : vector<16x1xi32>
    %cst = arith.constant 0.000000e+00 : f32
    %13 = vector.shape_cast %12 : vector<16x1xi1> to vector<16x1xi1>
    %14 = vector.broadcast %13 : vector<16x1xi1> to vector<16x16xi1>
    %15 = vector.broadcast %cst : f32 to vector<16x16xf32>
    %16 = arith.select %14, %3, %15 : vector<16x16xi1>, vector<16x16xf32>
    %cst_5 = arith.constant dense<0xFF800000> : vector<16xf32>
    %17 = vector.multi_reduction <maximumf>, %16, %cst_5 [1] : vector<16x16xf32> to vector<16xf32>
    %18 = vector.shape_cast %17 : vector<16xf32> to vector<16x1xf32>
    %19 = vector.broadcast %18 : vector<16x1xf32> to vector<16x16xf32>
    %20 = arith.subf %16, %19 : vector<16x16xf32>
    %21 = math.exp %20 : vector<16x16xf32>
    %cst_6 = arith.constant dense<0.000000e+00> : vector<16xf32>
    %22 = vector.multi_reduction <add>, %21, %cst_6 [1] : vector<16x16xf32> to vector<16xf32>
    %23 = vector.shape_cast %22 : vector<16xf32> to vector<16x1xf32>
    %24 = math.log %23 : vector<16x1xf32>
    %25 = arith.mulf %4, %20 : vector<16x16xf32>
    %cst_7 = arith.constant dense<0.000000e+00> : vector<16xf32>
    %26 = vector.multi_reduction <add>, %25, %cst_7 [1] : vector<16x16xf32> to vector<16xf32>
    %27 = vector.shape_cast %26 : vector<16xf32> to vector<16x1xf32>
    %28 = arith.subf %24, %27 : vector<16x1xf32>
    %cst_8 = arith.constant 0.000000e+00 : f32
    %29 = vector.broadcast %cst_8 : f32 to vector<16x1xf32>
    %30 = arith.select %12, %28, %29 : vector<16x1xi1>, vector<16x1xf32>
    %c0_9 = arith.constant 0 : index
    %c0_10 = arith.constant 0 : index
    %c0_11 = arith.constant 0 : index
    %31 = vector.load %arg4[%c0_9, %c0_10, %c0_11] : memref<1x16x1xf32, #tpu.memory_space<vmem>>, vector<1x16x1xf32>
    %32 = vector.shape_cast %30 : vector<16x1xf32> to vector<1x16x1xf32>
    %33 = arith.addf %31, %32 : vector<1x16x1xf32>
    %c0_12 = arith.constant 0 : index
    %c0_13 = arith.constant 0 : index
    %c0_14 = arith.constant 0 : index
    %34 = vector.load %arg4[%c0_12, %c0_13, %c0_14] : memref<1x16x1xf32, #tpu.memory_space<vmem>>, vector<1x16x1xf32>
    tpu.vector_store %arg4[%c0_12, %c0_13, %c0_14], %33 {strides = array<i32>} : memref<1x16x1xf32, #tpu.memory_space<vmem>>, vector<1x16x1xf32>,
    return
  }
  func.func @transform_0(%arg0: i32, %arg1: i32) -> (i32, i32) {
    %c1_i32 = arith.constant 1 : i32
    %0 = arith.muli %arg0, %c1_i32 : i32
    %1 = arith.addi %0, %arg1 : i32
    %c0_i32 = arith.constant 0 : i32
    %2 = arith.minsi %1, %c0_i32 : i32
    %c0_i32_0 = arith.constant 0 : i32
    %c0_i32_1 = arith.constant 0 : i32
    return %2, %c0_i32_0 : i32, i32
  }
  func.func @transform_1(%arg0: i32, %arg1: i32) -> (i32, i32) {
    %c1_i32 = arith.constant 1 : i32
    %0 = arith.muli %arg0, %c1_i32 : i32
    %1 = arith.addi %0, %arg1 : i32
    %c0_i32 = arith.constant 0 : i32
    %2 = arith.minsi %1, %c0_i32 : i32
    %c0_i32_0 = arith.constant 0 : i32
    %c0_i32_1 = arith.constant 0 : i32
    return %2, %c0_i32_0 : i32, i32
  }
  func.func @transform_2(%arg0: i32, %arg1: i32) -> (i32, i32, i32) {
    %c0_i32 = arith.constant 0 : i32
    %c0_i32_0 = arith.constant 0 : i32
    %c0_i32_1 = arith.constant 0 : i32
    return %arg0, %c0_i32, %c0_i32_0 : i32, i32, i32
  }
}

</mosaic_0001>

<bundles_post_ra>
// kernel: tpu_custom_call.1
= control target key start
LH: loop header
LB: loop body
LE: loop exit
PB: predicated region body
PF: predicated region fallthrough
CT: control target
= control target key end

     0   :  { %7 = vsyncpa [#allocation3], 0  ;;  %s271_s0 = inlined_call_operand.hbm [shape: f32[16,16], index: 0, kind: input, shape index: {}]   ;;  %s272_s1 = inlined_call_operand.hbm [shape: f32[16,16], index: 1, kind: input, shape index: {}]   ;;  %s273_s2 = inlined_call_operand.vmem [shape: f32[1,16,1], index: 2, kind: output, shape index: {}]  }
   0x1   :  { %8 = vsyncpa [#allocation5], 0  ;;  %s199_s9 = smov [#allocation2]   ;;  %s151_s13 = scalar_lea.hbm %s271_s0, 256 }
   0x2   :  { %s20_s10 = sshll.u32 %s199_s9, 4  ;;  %p152_p0 = scmp.ne.s32.totalorder %s271_s0, %s151_s13  ;;  %s21_s10 = int_to_ptr.vmem [resolvable:$true] %s20_s10 }
   0x3   :  { %p155_p1 = scmp.lt.u32.totalorder %s151_s13, %s271_s0 }
   0x5   :  { %p157_p2 = pnand %p155_p1, %p152_p0 }
   0x7   :  { %160 = shalt.err (!%p157_p2)
}
   0x8   :  { %s161_s18 = scalar_lea.vmem %s21_s10, 256  ;;  %p166_p4 = scmp.lt.s32.totalorder %s21_s10, %s21_s10 }
   0x9   :  { %p162_p3 = scmp.ne.s32.totalorder %s21_s10, %s161_s18  ;;  %p167_p5 = scmp.lt.s32.totalorder %s161_s18, %s161_s18 }
   0xb   :  { %p168_p6 = por %p167_p5, %p166_p4 }
   0xd   :  { %p169_p7 = pnand %p168_p6, %p162_p3 }
   0xf   :  { %172 = shalt.err (!%p169_p7)
}
  0x10   :  { %s200_s19 = smov 128   ;;  %s201_s20 = smov 8  }
  0x11   :  { %26 = dma.hbm_to_vmem [thread:$0]  %s271_s0, 256, %s21_s10, [#allocation3], %s200_s19, %s200_s19, %s201_s20  }
  0x12   :  { %s202_s23 = smov [#allocation4]   ;;  %s173_s27 = scalar_lea.hbm %s272_s1, 256 }
  0x13   :  { %s38_s24 = sshll.u32 %s202_s23, 4  ;;  %p174_p8 = scmp.ne.s32.totalorder %s272_s1, %s173_s27  ;;  %s39_s24 = int_to_ptr.vmem [resolvable:$true] %s38_s24 }
  0x14   :  { %p177_p9 = scmp.lt.u32.totalorder %s173_s27, %s272_s1 }
  0x16   :  { %p179_p10 = pnand %p177_p9, %p174_p8 }
  0x18   :  { %182 = shalt.err (!%p179_p10)
}
  0x19   :  { %s183_s4 = scalar_lea.vmem %s39_s24, 256  ;;  %p188_p12 = scmp.lt.s32.totalorder %s39_s24, %s39_s24 }
  0x1a   :  { %p184_p11 = scmp.ne.s32.totalorder %s39_s24, %s183_s4  ;;  %p189_p13 = scmp.lt.s32.totalorder %s183_s4, %s183_s4 }
  0x1c   :  { %p190_p0 = por %p189_p13, %p188_p12 }
  0x1e   :  { %p191_p1 = pnand %p190_p0, %p184_p11 }
  0x20   :  { %194 = shalt.err (!%p191_p1)
}
  0x21   :  { %44 = dma.hbm_to_vmem [thread:$0]  %s272_s1, 256, %s39_s24, [#allocation5], %s200_s19, %s200_s19, %s201_s20  }
  0x22   :  { %195 = dma.done.wait [#allocation3], 256  }
  0x23   :  { %196 = vsyncadd [#allocation3], 4294967040 }
  0x24   :  { %197 = dma.done.wait [#allocation5], 256  }
  0x25   :  { %198 = vsyncadd [#allocation5], 4294967040  ;;  %vm86_vm0 = vcmask 130048   ;;  %v66_v0 = vld [vmem:[#allocation2] sm:$0xff]  ;;  %v67_v1 = vld [vmem:[#allocation2 + $0x8] sm:$0xff]  ;;  %vm63_vm1 = vcmask 7168  }
  0x26   :  { %v87_v2 = vsel %vm86_vm0, %v66_v0, -inf  ;;  %v90_v3 = vsel %vm86_vm0, %v67_v1, -inf  ;;  %v68_v5 = vld [vmem:[#allocation4] sm:$0xff]  ;;  %v69_v15 = vld [vmem:[#allocation4 + $0x8] sm:$0xff]  ;;  %v203_v19 = vmov 0.0  }
  0x27   :  { %88 = vmax.xlane.f32.xlu0 %v87_v2  ;;  %64 = vst.msk [vmem:[%s273_s2] sm:$0xff] %vm63_vm1, %v203_v19  ;;  %65 = vst.msk [vmem:[%s273_s2 + $0x8] sm:$0xff] %vm63_vm1, %v203_v19 }
  0x2b   :  { %91 = vmax.xlane.f32.xlu0 %v90_v3 }
  0x2e   :  { %v121_v26 = vld [vmem:[%s273_s2] sm:$0xff]  ;;  %v122_v32 = vld [vmem:[%s273_s2 + $0x8] sm:$0xff] }
  0xb4   :  { %v89_v4 = vpop.xlane.xlu0 %88 }
  0xb5   :  { %v93_v6 = vsub.f32 %v66_v0, %v89_v4 }
  0xb7   :  { %v95_v7 = vmul.f32 1.442695, %v93_v6  ;;  %v109_v8 = vmul.f32 %v93_v6, %v68_v5 }
  0xb8   :  { %v92_v9 = vpop.xlane.xlu0 %91 }
  0xb9   :  { %143 = vpow2.f32 %v95_v7  ;;  %v94_v10 = vsub.f32 %v67_v1, %v92_v9  ;;  %v111_v11 = vsel %vm86_vm0, %v109_v8, 0.0 }
  0xba   :  { %112 = vadd.xlane.f32.xlu0 %v111_v11 }
  0xbb   :  { %v97_v12 = vmul.f32 1.442695, %v94_v10  ;;  %v110_v18 = vmul.f32 %v94_v10, %v69_v15 }
  0xbd   :  { %145 = vpow2.f32 %v97_v12  ;;  %v114_v20 = vsel %vm86_vm0, %v110_v18, 0.0 }
  0xc3   :  { %v144_v13 = vpop.eup %143 }
  0xc4   :  { %v99_v14 = vsel %vm86_vm0, %v144_v13, 0.0 }
  0xc5   :  { %100 = vadd.xlane.f32.xlu1 %v99_v14 }
  0xc7   :  { %v146_v16 = vpop.eup %145 }
  0xc8   :  { %v102_v17 = vsel %vm86_vm0, %v146_v16, 0.0 }
  0xc9   :  { %103 = vadd.xlane.f32.xlu1 %v102_v17 }
  0xcd   :  { %115 = vadd.xlane.f32.xlu1 %v114_v20 }
 0x147   :  { %v113_v25 = vpop.xlane.xlu0 %112 }
 0x152   :  { %v101_v21 = vpop.xlane.xlu1 %100 }
 0x153   :  { %147 = vlog2.f32 %v101_v21 }
 0x156   :  { %v104_v22 = vpop.xlane.xlu1 %103 }
 0x157   :  { %149 = vlog2.f32 %v104_v22 }
 0x15a   :  { %v116_v31 = vpop.xlane.xlu1 %115 }
 0x15d   :  { %v148_v23 = vpop.eup %147 }
 0x15e   :  { %v106_v24 = vmul.f32 0.6931472, %v148_v23 }
 0x160   :  { %v117_v27 = vsub.f32 %v106_v24, %v113_v25 }
 0x161   :  { %v150_v28 = vpop.eup %149 }
 0x162   :  { %v123_v29 = vadd.f32 %v121_v26, %v117_v27  ;;  %v108_v30 = vmul.f32 0.6931472, %v150_v28 }
 0x164   :  { %126 = vst.msk [vmem:[%s273_s2] sm:$0xff] %vm63_vm1, %v123_v29  ;;  %v118_v33 = vsub.f32 %v108_v30, %v116_v31 }
 0x166   :  { %v124_v34 = vadd.f32 %v122_v32, %v118_v33 }
 0x168   :  { %127 = vst.msk [vmem:[%s273_s2 + $0x8] sm:$0xff] %vm63_vm1, %v124_v34 }
 0x169   :  { %132 = vsyncpa [#allocation3], 1 }
 0x16a   :  { %133 = vsyncpa [#allocation5], 1 }

</bundles_post_ra>
